<compile_context>
chip_gen: v5e
topology: v5e:2x2
jax: 0.10.0
libtpu: 0.0.40
codegen_flags: <defaults>
</compile_context>

<pallas_src>
import jax
import jax.numpy as jnp
from jax.experimental import pallas as pl
from jax.experimental.pallas import tpu as pltpu


def _rope_kernel(inv_freq_ref, x_ref, o_ref, cos_ref, sin_ref):
    # inv_freq_ref: (1, D) f32 == concat([-inv_freq, +inv_freq])
    # x_ref, o_ref: (Bb, TS, D) current (seq-tile, batch-tile) block
    # cos_ref, sin_ref: (TS, D) scratch tables, persistent across grid steps
    s = pl.program_id(0)          # sequence-tile index (outer, "parallel")
    b = pl.program_id(1)          # batch-tile index    (inner, "arbitrary")
    TS, D = cos_ref.shape
    Dh = D // 2

    # Build the tables once per sequence tile; reuse across all batch steps.
    # NOTE: this relies on the batch axis being the innermost grid axis and
    # marked "arbitrary" — do not reorder the grid or mark it "parallel".
    @pl.when(b == 0)
    def _():
        pos = jax.lax.broadcasted_iota(jnp.int32, (TS, D), 0) + s * TS
        signed_freqs = pos.astype(jnp.float32) * inv_freq_ref[...]    # (TS, D)
        cos_ref[...] = jnp.cos(signed_freqs).astype(cos_ref.dtype)    # cos even
        sin_ref[...] = jnp.sin(signed_freqs).astype(sin_ref.dtype)    # signed sin

    compute_dtype = cos_ref.dtype
    x = x_ref[...].astype(compute_dtype)              # (Bb, TS, D)
    x_swapped = pltpu.roll(x, shift=Dh, axis=2)       # [x2, x1] via XLU, full width
    out = x * cos_ref[...] + x_swapped * sin_ref[...]  # tables broadcast over Bb
    o_ref[...] = out.astype(o_ref.dtype)


def _pick_tiles(batch, seq, d, x_itemsize, table_itemsize, budget_bytes):
    """Pick (TS, Bb) — seq-tile rows and batch block size.

    Budget counts the whole steady-state VMEM footprint:
        4 * Bb * TS * D * x_itemsize   (double-buffered input + output blocks)
      + 2 * TS * D * table_itemsize    (cos / signed-sin scratch tables)
    TS alignment follows sublane packing (f32: 8, bf16: 16, int8/fp8: 32) and
    we keep >= 2 sequence tiles so the "parallel" axis can shard across the two
    v7x TensorCores and the pipeline has >= 2 steps.
    """
    align = max(8, 32 // x_itemsize)
    row_bytes = 4 * d * x_itemsize + 2 * d * table_itemsize
    max_rows = max(1, budget_bytes // row_bytes)
    cap = min(seq, int(max_rows))
    if seq >= 2 * align:
        cap = min(cap, seq // 2)       # keep >= 2 seq tiles (megacore / pipeline)

    ts = None
    for a in (align, 8):               # prefer packed-dtype alignment, fall back to 8
        for cand in range(int(cap), 0, -1):
            if seq % cand == 0 and cand % a == 0:
                ts = cand
                break
        if ts is not None:
            break
    if ts is None:
        ts = seq                       # no usable divisor: whole sequence in one block

    # Grow the batch block within the remaining budget (divisor of batch).
    table_bytes = 2 * ts * d * table_itemsize
    per_batch = 4 * ts * d * x_itemsize
    max_bb = max(1, (budget_bytes - table_bytes) // per_batch)
    bb = 1
    for cand in range(min(batch, int(max_bb)), 0, -1):
        if batch % cand == 0:
            bb = cand
            break
    return ts, bb


def ntk_scaling_rotary_embedding(x, dim, base=10000.0, scaling_factor=1.0,
                                 seq_len=None, seq_tile=None, batch_tile=None,
                                 compute_dtype=None,
                                 vmem_budget_bytes=24 << 20):
    """x: (B, S, D) with D == dim. Returns rotated x with x's shape/dtype.

    compute_dtype: dtype of the cos/sin tables and the elementwise math.
      Defaults to float32 (safe on every TPU generation, matches the f32
      PyTorch reference). On v6e/v7x with bf16 inputs pass jnp.bfloat16 to
      halve VALU work, table load traffic and scratch VMEM (standard RoPE bf16
      precision trade-off — re-check tolerances). Keep f32 on v5e (no bf16 VPU).
    """
    B, S, D = x.shape
    assert D == dim and D % 2 == 0
    # TODO(synk): the PyTorch forward accepts seq_len != x.shape[1]; only the
    # (broadcast-valid) seq_len == x.shape[1] case is supported here.
    assert seq_len is None or seq_len == S

    compute_dtype = jnp.float32 if compute_dtype is None else jnp.dtype(compute_dtype)

    # Buffer setup matching the PyTorch module's __init__, with the half-split
    # sign folded into the row: cos(t*f) is even, so [-f, +f] yields the plain
    # cos table and the signed sin table directly (no lane select in-kernel).
    inv_freq = 1.0 / (
        base ** (jnp.arange(0, dim, 2, dtype=jnp.float32) / dim * scaling_factor)
    )
    inv_freq_signed = jnp.concatenate([-inv_freq, inv_freq]).reshape(1, D)

    x_item = x.dtype.itemsize
    tab_item = jnp.dtype(compute_dtype).itemsize
    auto_ts, auto_bb = _pick_tiles(B, S, D, x_item, tab_item, vmem_budget_bytes)
    TS = int(seq_tile) if seq_tile is not None else auto_ts
    Bb = int(batch_tile) if batch_tile is not None else auto_bb
    assert S % TS == 0 and (TS % 8 == 0 or TS == S), (
        "seq_tile must divide S and be a multiple of 8 (or the full sequence)")
    assert B % Bb == 0, "batch_tile must divide B"

    # Steady-state VMEM footprint; raise the scoped limit explicitly (v5e's
    # default is only 16 MiB). Auto-picked tiles stay <= ~24 MiB so they also
    # fit v7x's 64 MiB physical VMEM with double-buffering intact.
    footprint = 4 * Bb * TS * D * x_item + 2 * TS * D * tab_item
    vmem_limit = int(max(32 << 20, footprint + (2 << 20)))

    # Grid: seq tiles outer ("parallel" -> megacore), batch tiles innermost
    # ("arbitrary"). The batch axis MUST stay innermost + arbitrary because the
    # cos/sin scratch built at b == 0 is reused by the following batch steps.
    grid = (S // TS, B // Bb)

    return pl.pallas_call(
        _rope_kernel,
        out_shape=jax.ShapeDtypeStruct((B, S, D), x.dtype),
        grid_spec=pltpu.PrefetchScalarGridSpec(
            num_scalar_prefetch=0,
            grid=grid,
            in_specs=[
                pl.BlockSpec((1, D), lambda s, b: (0, 0)),          # signed inv_freq row
                pl.BlockSpec((Bb, TS, D), lambda s, b: (b, s, 0)),  # x block
            ],
            out_specs=pl.BlockSpec((Bb, TS, D), lambda s, b: (b, s, 0)),
            scratch_shapes=[
                pltpu.VMEM((TS, D), compute_dtype),   # cos table (per seq tile)
                pltpu.VMEM((TS, D), compute_dtype),   # signed sin table
            ],
        ),
        compiler_params=pltpu.CompilerParams(
            dimension_semantics=("parallel", "arbitrary"),
            vmem_limit_bytes=vmem_limit,
        ),
    )(inv_freq_signed, x)


def _reference(x, dim, base=10000.0, scaling_factor=1.0):
    # Pure-JAX reference mirroring the PyTorch forward.
    seq_len = x.shape[1]
    inv_freq = 1.0 / (
        base ** (jnp.arange(0, dim, 2, dtype=jnp.float32) / dim * scaling_factor)
    )
    t = jnp.arange(seq_len, dtype=jnp.float32)
    freqs = jnp.einsum("i,j->ij", t, inv_freq)
    cos = jnp.cos(freqs)[None, :, :]
    sin = jnp.sin(freqs)[None, :, :]
    x1 = x[..., : dim // 2]
    x2 = x[..., dim // 2:]
    return jnp.concatenate([x1 * cos - x2 * sin, x2 * cos + x1 * sin], axis=-1)


if __name__ == "__main__":
    B, S, D = 2, 128, 128   # small demo; D is lane-dense (multiple of 128)
    key = jax.random.PRNGKey(0)
    x = jax.random.normal(key, (B, S, D), dtype=jnp.float32)

    ref = _reference(x, dim=D)

    # Explicit small tiles: grid (4, 2) exercises the pl.when(b == 0) table
    # hoist + reuse across batch steps and the multi-tile pipeline.
    out = ntk_scaling_rotary_embedding(x, dim=D, base=10000.0,
                                       scaling_factor=1.0,
                                       seq_tile=32, batch_tile=1)
    out = jax.block_until_ready(out)
    assert out.shape == x.shape and out.dtype == x.dtype
    assert jnp.allclose(out, ref, atol=2e-4, rtol=2e-4)

    # Auto tiling: picks TS = 64 (keeps >= 2 seq tiles for the parallel axis)
    # and a batch-blocked Bb = 2, i.e. grid (2, 1).
    out2 = jax.block_until_ready(ntk_scaling_rotary_embedding(x, dim=D))
    assert jnp.allclose(out2, ref, atol=2e-4, rtol=2e-4)

    print("KERNEL_OK")
</pallas_src>

<mosaic_0001>
module attributes {stable_mosaic.version = 11 : i64} {
  func.func @_rope_kernel(%arg0: i32, %arg1: i32, %arg2: memref<1x128xf32, #tpu.memory_space<vmem>>, %arg3: memref<1x32x128xf32, #tpu.memory_space<vmem>>, %arg4: memref<1x32x128xf32, #tpu.memory_space<vmem>>, %arg5: memref<32x128xf32, #tpu.memory_space<vmem>>, %arg6: memref<32x128xf32, #tpu.memory_space<vmem>>) attributes {dimension_semantics = [#tpu.dimension_semantics<parallel>, #tpu.dimension_semantics<arbitrary>], iteration_bounds = array<i64: 4, 2>, scalar_prefetch = 0 : i64, scratch_operands = 2 : i64, tpu.core_type = #tpu.core_type<tc>, window_params = [{pipeline_mode = #tpu.pipeline_mode<synchronous>, transform_indices = @transform_0, window_bounds = array<i64: 1, 128>}, {transform_indices = @transform_1, window_bounds = array<i64: 1, 32, 128>}, {transform_indices = @transform_2, window_bounds = array<i64: 1, 32, 128>}]} {
    %c0_i32 = arith.constant 0 : i32
    %0 = arith.cmpi eq, %arg1, %c0_i32 : i32
    %1 = arith.extui %0 : i1 to i32
    %c0_i32_0 = arith.constant 0 : i32
    %2 = arith.cmpi ne, %1, %c0_i32_0 : i32
    scf.if %2 {
      %13 = tpu.iota {dimensions = array<i32: 0>} : vector<32x128xi32>
      %c32_i32 = arith.constant 32 : i32
      %14 = arith.muli %arg0, %c32_i32 : i32
      %15 = vector.broadcast %14 : i32 to vector<32x128xi32>
      %16 = arith.addi %13, %15 : vector<32x128xi32>
      %17 = arith.sitofp %16 : vector<32x128xi32> to vector<32x128xf32>
      %c0_10 = arith.constant 0 : index
      %c0_11 = arith.constant 0 : index
      %18 = vector.load %arg2[%c0_10, %c0_11] : memref<1x128xf32, #tpu.memory_space<vmem>>, vector<1x128xf32>
      %19 = vector.broadcast %18 : vector<1x128xf32> to vector<32x128xf32>
      %20 = arith.mulf %17, %19 : vector<32x128xf32>
      %21 = math.cos %20 : vector<32x128xf32>
      %c0_12 = arith.constant 0 : index
      %c0_13 = arith.constant 0 : index
      %22 = vector.load %arg5[%c0_12, %c0_13] : memref<32x128xf32, #tpu.memory_space<vmem>>, vector<32x128xf32>
      tpu.vector_store %arg5[%c0_12, %c0_13], %21 {strides = array<i32>} : memref<32x128xf32, #tpu.memory_space<vmem>>, vector<32x128xf32>,
      %23 = math.sin %20 : vector<32x128xf32>
      %c0_14 = arith.constant 0 : index
      %c0_15 = arith.constant 0 : index
      %24 = vector.load %arg6[%c0_14, %c0_15] : memref<32x128xf32, #tpu.memory_space<vmem>>, vector<32x128xf32>
      tpu.vector_store %arg6[%c0_14, %c0_15], %23 {strides = array<i32>} : memref<32x128xf32, #tpu.memory_space<vmem>>, vector<32x128xf32>,
    } else {
    }
    %c0 = arith.constant 0 : index
    %c0_1 = arith.constant 0 : index
    %c0_2 = arith.constant 0 : index
    %3 = vector.load %arg3[%c0, %c0_1, %c0_2] : memref<1x32x128xf32, #tpu.memory_space<vmem>>, vector<1x32x128xf32>
    %c64_i32 = arith.constant 64 : i32
    %4 = tpu.dynamic_rotate %3 by %c64_i32 dim 2 : vector<1x32x128xf32>, i32 -> vector<1x32x128xf32>
    %c0_3 = arith.constant 0 : index
    %c0_4 = arith.constant 0 : index
    %5 = vector.load %arg5[%c0_3, %c0_4] : memref<32x128xf32, #tpu.memory_space<vmem>>, vector<32x128xf32>
    %6 = vector.shape_cast %5 : vector<32x128xf32> to vector<1x32x128xf32>
    %7 = arith.mulf %3, %6 : vector<1x32x128xf32>
    %c0_5 = arith.constant 0 : index
    %c0_6 = arith.constant 0 : index
    %8 = vector.load %arg6[%c0_5, %c0_6] : memref<32x128xf32, #tpu.memory_space<vmem>>, vector<32x128xf32>
    %9 = vector.shape_cast %8 : vector<32x128xf32> to vector<1x32x128xf32>
    %10 = arith.mulf %4, %9 : vector<1x32x128xf32>
    %11 = arith.addf %7, %10 : vector<1x32x128xf32>
    %c0_7 = arith.constant 0 : index
    %c0_8 = arith.constant 0 : index
    %c0_9 = arith.constant 0 : index
    %12 = vector.load %arg4[%c0_7, %c0_8, %c0_9] : memref<1x32x128xf32, #tpu.memory_space<vmem>>, vector<1x32x128xf32>
    tpu.vector_store %arg4[%c0_7, %c0_8, %c0_9], %11 {strides = array<i32>} : memref<1x32x128xf32, #tpu.memory_space<vmem>>, vector<1x32x128xf32>,
    return
  }
  func.func @transform_0(%arg0: i32, %arg1: i32) -> (i32, i32) {
    %c0_i32 = arith.constant 0 : i32
    %c0_i32_0 = arith.constant 0 : i32
    %c0_i32_1 = arith.constant 0 : i32
    return %c0_i32, %c0_i32_0 : i32, i32
  }
  func.func @transform_1(%arg0: i32, %arg1: i32) -> (i32, i32, i32) {
    %c0_i32 = arith.constant 0 : i32
    %c0_i32_0 = arith.constant 0 : i32
    return %arg1, %arg0, %c0_i32 : i32, i32, i32
  }
  func.func @transform_2(%arg0: i32, %arg1: i32) -> (i32, i32, i32) {
    %c0_i32 = arith.constant 0 : i32
    %c0_i32_0 = arith.constant 0 : i32
    return %arg1, %arg0, %c0_i32 : i32, i32, i32
  }
}

</mosaic_0001>

<bundles_post_ra>
// kernel: tpu_custom_call.1
= control target key start
LH: loop header
LB: loop body
LE: loop exit
PB: predicated region body
PF: predicated region fallthrough
CT: control target
= control target key end

     0   :  { %s2615_s0 = inlined_call_operand.hbm [shape: f32[1,128], index: 0, kind: input, shape index: {}]   ;;  %s2616_s1 = inlined_call_operand.hbm [shape: f32[2,128,128], index: 1, kind: input, shape index: {}]   ;;  %s2617_s2 = inlined_call_operand.hbm [shape: f32[2,128,128], index: 2, kind: output, shape index: {}]  }
   0x1   :  { %2627 = sst [smem:[#allocation19_spill]] %s2615_s0 }
   0x2   :  { %2628 = sst [smem:[#allocation20_spill]] %s2617_s2 }
   0x3   :  { %7 = vsyncpa [#allocation5], 0 }
   0x4   :  { %8 = vsyncpa [#allocation8], 0 }
   0x5   :  { %10 = vsyncpa [#allocation8 + $0x1], 0 }
   0x6   :  { %11 = vsyncpa [#allocation6], 0 }
   0x7   :  { %13 = vsyncpa [#allocation6 + $0x1], 0  ;;  %s1965_s9 = smov 0   ;;  %s1967_s10 = smov 0  }
   0x8   :  { %s1969_s11 = smov 0   ;;  %s1971_s12 = smov 0  }
   0x9   :  { %s1973_s13 = smov 0   ;;  %s1975_s14 = smov 0  }
   0xa   :  { %s1977_s15 = smov 0   ;;  %s1979_s16 = smov 0  }
   0xb LB: > { %2629 = sst [smem:[#allocation13_spill]] %s1907_s9  ;;  %s1626_s17 = sadd.s32 4294967295, %s1935_s16   ;;  %s1935_s16 = sphi %s1979_s16, %s19_s16   ;;  %s1931_s15 = sphi %s1977_s15, %s2662_s15   ;;  %s1927_s14 = sphi %s1975_s14, %s2661_s14   ;;  %s1923_s13 = sphi %s1973_s13, %s2660_s13   ;;  %s1919_s12 = sphi %s1971_s12, %s2655_s12   ;;  %s1915_s11 = sphi %s1969_s11, %s2659_s11   ;;  %s1911_s10 = sphi %s1967_s10, %s2658_s10   ;;  %s1907_s9 = sphi %s1965_s9, %s2657_s9  }
   0xc   : > { %2630 = sst [smem:[#allocation14_spill]] %s1927_s14  ;;  %s1627_s18 = sadd.s32 4294967294, %s1935_s16  }
   0xd   : > { %2631 = sst [smem:[#allocation15_spill]] %s1935_s16  ;;  %p68_p0 = scmp.ne.s32.totalorder %s1915_s11, %s1911_s10 }
   0xe   : > { %p69_p1 = scmp.eq.s32.totalorder %s1935_s16, 0  ;;  %p74_p2 = scmp.ne.s32.totalorder %s1911_s10, %s1907_s9 }
   0xf   : > { %p2013_p3 = scmp.eq.s32.totalorder %s1626_s17, 0  ;;  %p100_p4 = scmp.eq.s32.totalorder %s1626_s17, 7 }
  0x10   : > { %p2017_p5 = por %p69_p1, %p68_p0  ;;  %p106_p6 = scmp.eq.s32.totalorder %s1627_s18, 7 }
  0x11   : > { %p2023_p7 = por %p2013_p3, %p74_p2  ;;  %p2027_p8 = por %p100_p4, %p68_p0 }
  0x12   : > { %p2031_p9 = por %p106_p6, %p74_p2  ;;  %p1628_p10 = scmp.ge.s32.totalorder %s1935_s16, 1 }
  0x13   : > { %s2635_s23 = scalar_select %p2027_p8, 1, 0 }
  0x14   : > { %s2637_s24 = scalar_select %p2031_p9, 1, 0 }
  0x15   : > { %2636 = sst [smem:[#allocation16_spill]] %s2635_s23  ;;  %p113_p11 = scmp.lt.s32.totalorder %s1935_s16, 9 }
  0x16   : > { %2638 = sst [smem:[#allocation17_spill]] %s2637_s24  ;;  %s1937_s29 = smov [#allocation4]  }
  0x17   : > { %s2639_s0 = sld [smem:[#allocation19_spill]]  ;;  %p2040_p12 = pnand %p1628_p10, %p113_p11 }
  0x18   : > { %s127_s30 = sshll.u32 %s1937_s29, 4  ;;  %p1692_p0 = scmp.lt.s32.totalorder %s1935_s16, 8  ;;  %s128_s30 = int_to_ptr.vmem [resolvable:$true] %s127_s30 }
  0x19   : > { %p1679_p13 = pneg %p2040_p12  ;;  %s28_s4 = sadd.s32 1, %s1927_s14 }
  0x1a   : > { %p2051_p2 = pnand %p1692_p0, %p2017_p5  ;;  %p29_p4 = scmp.ge.s32.totalorder %s28_s4, 2 }
  0x1b   : > { %p1680_p1 = pnand %p1679_p13, %p2013_p3  ;;  %s31_s5 = sadd.s32 1, %s1931_s15 }
  0x1c   : > { %s138_s6 = sand.u32 1, %s1915_s11   ;;  %s1632_s7 = sshll.u32 %s1931_s15, 2 }
  0x1d   : > { %s125_s27 = sshll.u32 %s2639_s0, 4  ;;  %s2664_s4 = smov (%p29_p4, %s28_s4), 0  ;;  %s126_s27 = int_to_ptr.hbm [resolvable:$true] %s125_s27 }
  0x1e   : > { %1682 = dma.hbm_to_vmem [thread:$0]  (!%p1680_p1), %s126_s27, 16, %s128_s30, [#allocation5]  }
  0x1f   : > { %2642 = sst [smem:[#allocation18_spill]] %s2664_s4  ;;  %s2666_s5 = smov (!%p29_p4, %s31_s5), %s1931_s15 }
  0x20   : > { %s56_s8 = ssub.s32 %s1927_s14, %s2664_s4  ;;  %p33_p6 = scmp.ge.s32.totalorder %s2666_s5, 4 }
  0x21   : > { %s1631_s17 = sshll.u32 %s138_s6, 5  ;;  %s1633_s18 = sshll.u32 %s1927_s14, 4 }
  0x22   : > { %s2668_s5 = smov (%p33_p6, %s2666_s5), 0  ;;  %s147_s21 = sadd.s32 %s1633_s18, %s1632_s7 }
  0x23   : > { %s142_s25 = scalar_lea.vmem [#allocation7], %s1631_s17  ;;  %s57_s27 = ssub.s32 %s1931_s15, %s2668_s5 }
  0x24   : > { %s152_s26 = sshll.u32 %s142_s25, 4  ;;  %s1634_s29 = sshll.u32 %s147_s21, 3  ;;  %s153_s26 = int_to_ptr.vmem [resolvable:$true] %s152_s26 }
  0x25   : > { %s58_s30 = sor.u32 %s57_s27, %s56_s8  ;;  %s149_s24 = scalar_lea.hbm %s2616_s1, %s1634_s29 }
  0x26   : > { %p59_p5 = scmp.eq.s32.totalorder %s58_s30, 0  ;;  %s150_s4 = sshll.u32 %s149_s24, 4  ;;  %s151_s4 = int_to_ptr.hbm [resolvable:$true] %s150_s4 }
  0x27   : > { %s2643_s9 = sadd.s32 1, %s1915_s11  ;;  %s139_s16 = scalar_lea.sflag [#allocation8], %s138_s6 }
  0x28   : > { %s2075_s14 = scalar_select %p59_p5, %s1915_s11, %s2643_s9  }
  0x29   : > { %s1938_s23 = smov 128   ;;  %s1939_s2 = smov 8  }
  0x2a   : > { %1686 = dma.hbm_to_vmem [thread:$0]  (!%p2051_p2), %s151_s4, 512, %s153_s26, %s139_s16, %s1938_s23, %s1938_s23, %s1939_s2  }
  0x2b   : > { %164 = sbr.rel (%p2040_p12) target bundleno = 398 (0x18e), region = 28 }
  0x30   : > { %1894 = dma.done.wait (%p2013_p3), [#allocation5], 16  }
  0x31   : > { %1896 = vsyncadd (%p2013_p3), [#allocation5], 4294967280  ;;  %s2086_s0 = sand.u32 1, %s1911_s10  }
  0x32   : > { %s1637_s9 = sshll.u32 %s2086_s0, 5  ;;  %s172_s19 = scalar_lea.sflag [#allocation8], %s2086_s0 }
  0x33   : > { %s2090_s24 = scalar_lea.vmem [#allocation7], %s1637_s9 }
  0x34   : > { %1898 = dma.done.wait (%p2023_p7), %s172_s19, 512  }
  0x35   : > { %1900 = vsyncadd (%p2023_p7), %s172_s19, 4294966784  ;;  %s2096_s2 = scalar_lea.vmem [#allocation9], %s1637_s9  ;;  %p1639_p10 = scmp.ne.s32.totalorder %s1919_s12, 0 }
  0x36   : > { %s1640_s16 = sshll.u32 (!%p1639_p10), %s1923_s13, 5 }
  0x37   : > { %202 = sbr.rel (%p1639_p10) target bundleno = 265 (0x109), region = 40 }
  0x3c   : > { %v203_v0 = vlaneseq  ;;  %v209_v1 = vstv %s1640_s16  ;;  %v1772_v7 = vld [vmem:[#allocation4] ss:$0 sm:$0xff]  ;;  %v1940_v41 = vmov 683565275   ;;  %v1941_v43 = vmov 2475754826  }
  0x3d   : > { %v1942_v45 = vmov 2131351028   ;;  %v1943_v47 = vmov 2102212464   ;;  %v1944_v49 = vmov 920167782  }
  0x3e   : > { %v204_v2 = vshrl.u32 %v203_v0, 7  ;;  %v1945_v58 = vmov 1326507024  }
  0x40   : > { %v205_v3 = vadd.s32 8, %v204_v2  ;;  %v206_v4 = vadd.s32 16, %v204_v2  ;;  %v207_v5 = vadd.s32 24, %v204_v2  ;;  %v210_v6 = vadd.s32 %v209_v1, %v204_v2 }
  0x42   : > { %v211_v8 = vadd.s32 %v209_v1, %v205_v3  ;;  %v212_v9 = vadd.s32 %v209_v1, %v206_v4  ;;  %v213_v10 = vadd.s32 %v209_v1, %v207_v5  ;;  %v214_v11 = vcvt.s32.f32 %v210_v6 }
  0x44   : > { %v215_v12 = vcvt.s32.f32 %v211_v8  ;;  %v216_v13 = vcvt.s32.f32 %v212_v9  ;;  %v217_v14 = vcvt.s32.f32 %v213_v10  ;;  %v2100_v15 = vmul.f32 %v1772_v7, %v214_v11 }
  0x46   : > { %v2102_v16 = vmul.f32 %v1772_v7, %v215_v12  ;;  %v2104_v17 = vmul.f32 %v1772_v7, %v216_v13  ;;  %v2106_v18 = vmul.f32 %v1772_v7, %v217_v14  ;;  %v226_v19 = vand.u32 2147483647, %v2100_v15 }
  0x47   : > { %v229_v20 = vand.u32 2139095040, %v2100_v15 }
  0x48   : > { %v233_v21 = vand.u32 8388607, %v226_v19  ;;  %v383_v23 = vand.u32 2139095040, %v2102_v16  ;;  %v380_v24 = vand.u32 2147483647, %v2102_v16  ;;  %v537_v25 = vand.u32 2139095040, %v2104_v17 }
  0x49   : > { %v230_v22 = vshrl.u32 %v229_v20, 23 }
  0x4a   : > { %v384_v27 = vshrl.u32 %v383_v23, 23  ;;  %v234_v28 = vor.u32 8388608, %v233_v21  ;;  %v387_v31 = vand.u32 8388607, %v380_v24  ;;  %v538_v32 = vshrl.u32 %v537_v25, 23 }
  0x4b   : > { %v1641_v26 = vadd.s32 4294967169, %v230_v22 }
  0x4c   : > { %v1644_v30 = vadd.s32 4294967169, %v384_v27  ;;  %v2117_v35 = vshll.u32 %v234_v28, 8  ;;  %v388_v38 = vor.u32 8388608, %v387_v31  ;;  %v2119_v39 = vadd.s32 4294967169, %v538_v32 }
  0x4d   : > { %v236_v29 = vadd.s32 1, %v1641_v26 }
  0x4e   : > { %v390_v33 = vadd.s32 1, %v1644_v30  ;;  %v275_v51 = vand.u32 65535, %v2117_v35  ;;  %v276_v12 = vshrl.u32 %v2117_v35, 16  ;;  %v2140_v13 = vshll.u32 %v388_v38, 8 }
  0x4f   : > { %vm237_vm0 = vcmp.gt.s32.totalorder %v236_v29, 0 }
  0x50   : > { %v238_v34 = vsel %vm237_vm0, %v236_v29, 0  ;;  %vm391_vm1 = vcmp.gt.s32.totalorder %v390_v33, 0 }
  0x51   : > { %v240_v36 = vand.u32 31, %v238_v34  ;;  %v239_v37 = vshrl.u32 %v238_v34, 5  ;;  %v392_v52 = vsel %vm391_vm1, %v390_v33, 0 }
  0x52   : > { %v2134_v1 = vand.u32 31, %v392_v52  ;;  %v2147_v22 = vshrl.u32 %v392_v52, 5 }
  0x53   : > { %v241_v40 = vsub.s32 32, %v240_v36  ;;  %v243_v42 = vshll.u32 %v1940_v41, %v240_v36  ;;  %v246_v44 = vshll.u32 %v1941_v43, %v240_v36  ;;  %v249_v46 = vshll.u32 %v1942_v45, %v240_v36 }
  0x54   : > { %v252_v48 = vshll.u32 %v1943_v47, %v240_v36  ;;  %v255_v50 = vshll.u32 %v1944_v49, %v240_v36  ;;  %vm258_vm2 = vcmp.lt.s32.totalorder %v239_v37, 1  ;;  %vm259_vm3 = vcmp.lt.s32.totalorder %v239_v37, 2 }
  0x55   : > { %v242_v53 = vshrl.u32 %v1940_v41, %v241_v40  ;;  %v244_v54 = vshrl.u32 %v1941_v43, %v241_v40  ;;  %v247_v55 = vshrl.u32 %v1942_v45, %v241_v40  ;;  %v250_v56 = vshrl.u32 %v1943_v47, %v241_v40 }
  0x56   : > { %v253_v57 = vshrl.u32 %v1944_v49, %v241_v40  ;;  %v256_v59 = vshrl.u32 %v1945_v58, %v241_v40  ;;  %vm261_vm4 = vcmp.lt.s32.totalorder %v239_v37, 4  ;;  %vm260_vm5 = vcmp.lt.s32.totalorder %v239_v37, 3 }
  0x57   : > { %v245_v60 = vor.u32 %v244_v54, %v243_v42  ;;  %v248_v61 = vor.u32 %v247_v55, %v246_v44  ;;  %v251_v62 = vor.u32 %v250_v56, %v249_v46  ;;  %v2137_v9 = vsub.s32 32, %v2134_v1 }
  0x58   : > { %v254_v63 = vor.u32 %v253_v57, %v252_v48  ;;  %v257_v0 = vor.u32 %v256_v59, %v255_v50  ;;  %v397_v28 = vshll.u32 %v1940_v41, %v2134_v1  ;;  %v400_v30 = vshll.u32 %v1941_v43, %v2134_v1 }
  0x59   : > { %v262_v2 = vsel %vm258_vm2, %v242_v53, %v245_v60  ;;  %v263_v3 = vsel %vm261_vm4, %v251_v62, 2102212464  ;;  %v266_v4 = vsel %vm258_vm2, %v245_v60, %v248_v61  ;;  %v270_v5 = vsel %vm258_vm2, %v248_v61, %v251_v62 }
  0x5a   : > { %v264_v6 = vsel %vm260_vm5, %v248_v61, %v263_v3  ;;  %v267_v7 = vsel %vm261_vm4, %v254_v63, 920167782  ;;  %v271_v8 = vsel %vm261_vm4, %v257_v0, 1326507024  ;;  %v398_v29 = vshrl.u32 %v1941_v43, %v2137_v9 }
  0x5b   : > { %v268_v10 = vsel %vm260_vm5, %v251_v62, %v267_v7  ;;  %v272_v11 = vsel %vm260_vm5, %v254_v63, %v271_v8  ;;  %v2143_v14 = vsel %vm259_vm3, %v262_v2, %v264_v6  ;;  %v401_v31 = vshrl.u32 %v1942_v45, %v2137_v9 }
  0x5c   : > { %v269_v20 = vsel %vm259_vm3, %v266_v4, %v268_v10  ;;  %v273_v21 = vsel %vm259_vm3, %v270_v5, %v272_v11  ;;  %v403_v36 = vshll.u32 %v1942_v45, %v2134_v1  ;;  %v2159_v59 = vor.u32 %v398_v29, %v397_v28 }
  0x5d   : > { %v277_v23 = vand.u32 65535, %v273_v21  ;;  %v278_v25 = vshrl.u32 %v273_v21, 16  ;;  %v299_v26 = vand.u32 65535, %v269_v20  ;;  %v300_v27 = vshrl.u32 %v269_v20, 16 }
  0x5e   : > { %v1946_v60 = vmov 0   ;;  %v406_v2 = vshll.u32 %v1943_v47, %v2134_v1  ;;  %v2168_v5 = vor.u32 %v401_v31, %v400_v30  ;;  %v407_v10 = vshrl.u32 %v1944_v49, %v2137_v9 }
  0x5f   : > { %v279_v32 = vmul.u32 %v277_v23, %v275_v51  ;;  %v280_v33 = vmul.u32 %v278_v25, %v275_v51  ;;  %v281_v34 = vmul.u32 %v277_v23, %v276_v12  ;;  %v282_v37 = vmul.u32 %v278_v25, %v276_v12 }
  0x60   : > { %v301_v38 = vmul.u32 %v299_v26, %v275_v51  ;;  %v302_v40 = vmul.u32 %v300_v27, %v275_v51  ;;  %v303_v42 = vmul.u32 %v299_v26, %v276_v12  ;;  %v304_v50 = vmul.u32 %v300_v27, %v276_v12 }
  0x61   : > { %v283_v44 = vshll.u32 %v280_v33, 16  ;;  %v284_v46 = vshrl.u32 %v280_v33, 16  ;;  %v285_v48 = vshll.u32 %v281_v34, 16  ;;  %v286_v52 = vshrl.u32 %v281_v34, 16 }
  0x62   : > { %v305_v53 = vshll.u32 %v302_v40, 16  ;;  %v306_v54 = vshrl.u32 %v302_v40, 16  ;;  %v307_v55 = vshll.u32 %v303_v42, 16  ;;  %v308_v57 = vshrl.u32 %v303_v42, 16 }
  0x63   : > { %vm287_vm6 = vc.u32 %v279_v32, %v283_v44  ;;  %v289_v56 = vadd.s32 %v283_v44, %v279_v32  ;;  %v404_v51 = vshrl.u32 %v1943_v47, %v2137_v9  ;;  %v409_v12 = vshll.u32 %v1944_v49, %v2134_v1 }
  0x64   : > { %v288_v61 = vsel %vm287_vm6, 1, %v1946_v60  ;;  %vm309_vm7 = vc.u32 %v301_v38, %v305_v53  ;;  %v311_v62 = vadd.s32 %v305_v53, %v301_v38  ;;  %v410_v20 = vshrl.u32 %v1945_v58, %v2137_v9 }
  0x65   : > { %v290_v63 = vadd.s32 %v288_v61, %v282_v37  ;;  %vm291_vm8 = vc.u32 %v289_v56, %v285_v48  ;;  %v310_v0 = vsel %vm309_vm7, 1, %v1946_v60  ;;  %v405_v8 = vor.u32 %v404_v51, %v403_v36 }
  0x66   : > { %v292_v3 = vsel %vm291_vm8, 1, %v1946_v60  ;;  %v312_v4 = vadd.s32 %v310_v0, %v304_v50  ;;  %vm313_vm9 = vc.u32 %v311_v62, %v307_v55  ;;  %vm412_vm10 = vcmp.lt.s32.totalorder %v2147_v22, 1 }
  0x67   : > { %v294_v6 = vadd.s32 %v292_v3, %v290_v63  ;;  %v314_v7 = vsel %vm313_vm9, 1, %v1946_v60  ;;  %v2178_v23 = vadd.s32 %v311_v62, %v307_v55  ;;  %v408_v25 = vor.u32 %v407_v10, %v406_v2 }
  0x68   : > { %v316_v11 = vadd.s32 %v314_v7, %v312_v4  ;;  %vm414_vm11 = vcmp.lt.s32.totalorder %v2147_v22, 3  ;;  %v411_v27 = vor.u32 %v410_v20, %v409_v12  ;;  %vm413_vm12 = vcmp.lt.s32.totalorder %v2147_v22, 2 }
  0x69   : > { %v295_v21 = vadd.s32 %v294_v6, %v284_v46  ;;  %vm415_vm13 = vcmp.lt.s32.totalorder %v2147_v22, 4  ;;  %v420_v1 = vsel %vm412_vm10, %v2159_v59, %v2168_v5  ;;  %v544_v30 = vadd.s32 1, %v2119_v39 }
  0x6a   : > { %v317_v26 = vadd.s32 %v316_v11, %v306_v54  ;;  %v421_v29 = vsel %vm415_vm13, %v408_v25, 920167782  ;;  %v429_v33 = vand.u32 65535, %v2140_v13  ;;  %v430_v34 = vshrl.u32 %v2140_v13, 16 }
  0x6b   : > { %v2183_v28 = vadd.s32 %v295_v21, %v286_v52  ;;  %v422_v32 = vsel %vm414_vm11, %v405_v8, %v421_v29  ;;  %v319_v36 = vmul.u32 %v2117_v35, %v2143_v14  ;;  %v424_v39 = vsel %vm412_vm10, %v2168_v5, %v405_v8 }
  0x6c   : > { %v318_v31 = vadd.s32 %v317_v26, %v308_v57  ;;  %v423_v37 = vsel %vm413_vm12, %v420_v1, %v422_v32  ;;  %v425_v40 = vsel %vm415_vm13, %v411_v27, 1326507024  ;;  %vm545_vm15 = vcmp.gt.s32.totalorder %v544_v30, 0 }
  0x6d   : > { %vm321_vm14 = vc.u32 %v2183_v28, %v2178_v23  ;;  %v453_v42 = vand.u32 65535, %v423_v37  ;;  %v454_v44 = vshrl.u32 %v423_v37, 16  ;;  %v426_v46 = vsel %vm414_vm11, %v408_v25, %v425_v40 }
  0x6e   : > { %v322_v38 = vadd.s32 1, %v318_v31  ;;  %v427_v14 = vsel %vm413_vm12, %v424_v39, %v426_v46  ;;  %v396_v63 = vshrl.u32 %v1940_v41, %v2137_v9  ;;  %v534_v2 = vand.u32 2147483647, %v2104_v17 }
  0x6f   : > { %v456_v48 = vmul.u32 %v454_v44, %v429_v33  ;;  %v431_v52 = vand.u32 65535, %v427_v14  ;;  %v432_v53 = vshrl.u32 %v427_v14, 16  ;;  %v455_v54 = vmul.u32 %v453_v42, %v429_v33 }
  0x70   : > { %v323_v35 = vsel %vm321_vm14, %v322_v38, %v318_v31  ;;  %v457_v55 = vmul.u32 %v453_v42, %v430_v34  ;;  %v546_v3 = vsel %vm545_vm15, %v544_v30, 0  ;;  %v417_v11 = vsel %vm415_vm13, %v405_v8, 2102212464 }
  0x71   : > { %v324_v50 = vadd.s32 %v323_v35, %v319_v36  ;;  %v459_v56 = vshll.u32 %v456_v48, 16  ;;  %v433_v61 = vmul.u32 %v431_v52, %v429_v33  ;;  %v434_v62 = vmul.u32 %v432_v53, %v429_v33 }
  0x72   : > { %v435_v51 = vmul.u32 %v431_v52, %v430_v34  ;;  %v461_v0 = vshll.u32 %v457_v55, 16  ;;  %v436_v6 = vmul.u32 %v432_v53, %v430_v34  ;;  %v458_v12 = vmul.u32 %v454_v44, %v430_v34 }
  0x73   : > { %v325_v57 = vadd.s32 536870912, %v324_v50  ;;  %v437_v7 = vshll.u32 %v434_v62, 16  ;;  %vm463_vm0 = vc.u32 %v455_v54, %v459_v56  ;;  %v465_v20 = vadd.s32 %v459_v56, %v455_v54 }
  0x74   : > { %v439_v10 = vshll.u32 %v435_v51, 16  ;;  %v548_v9 = vand.u32 31, %v546_v3  ;;  %v460_v27 = vshrl.u32 %v456_v48, 16  ;;  %v464_v1 = vsel %vm463_vm0, 1, %v1946_v60 }
  0x75   : > { %v2214_v4 = vshrl.u32 %v325_v57, 30  ;;  %vm441_vm1 = vc.u32 %v433_v61, %v437_v7  ;;  %v443_v25 = vadd.s32 %v437_v7, %v433_v61  ;;  %vm467_vm2 = vc.u32 %v465_v20, %v461_v0 }
  0x76   : > { %v442_v26 = vsel %vm441_vm1, 1, %v1946_v60  ;;  %v438_v30 = vshrl.u32 %v434_v62, 16  ;;  %v440_v32 = vshrl.u32 %v435_v51, 16  ;;  %v466_v33 = vadd.s32 %v464_v1, %v458_v12 }
  0x77   : > { %v327_v21 = vshll.u32 %v2214_v4, 30  ;;  %v444_v31 = vadd.s32 %v442_v26, %v436_v6  ;;  %vm445_vm3 = vc.u32 %v443_v25, %v439_v10  ;;  %v468_v34 = vsel %vm467_vm2, 1, %v1946_v60 }
  0x78   : > { %v446_v8 = vsel %vm445_vm3, 1, %v1946_v60  ;;  %v2223_v39 = vsub.s32 32, %v548_v9  ;;  %v416_v38 = vsel %vm412_vm10, %v396_v63, %v2159_v59  ;;  %v418_v40 = vsel %vm414_vm11, %v2168_v5, %v417_v11 }
  0x79   : > { %v328_v29 = vsub.s32 %v324_v50, %v327_v21  ;;  %v448_v37 = vadd.s32 %v446_v8, %v444_v31  ;;  %v462_v42 = vshrl.u32 %v457_v55, 16  ;;  %v470_v44 = vadd.s32 %v468_v34, %v466_v33 }
  0x7a   : > { %v541_v14 = vand.u32 8388607, %v534_v2  ;;  %v2233_v48 = vshrl.u32 %v546_v3, 5  ;;  %v320_v50 = vadd.s32 %v2178_v23, %v2183_v28  ;;  %v2237_v53 = vadd.s32 %v465_v20, %v461_v0 }
  0x7b   : > { %vm329_vm4 = vcmp.lt.s32.totalorder %v328_v29, 0  ;;  %v330_v36 = vsub.s32 0, %v328_v29  ;;  %v449_v35 = vadd.s32 %v448_v37, %v438_v30  ;;  %v471_v59 = vadd.s32 %v470_v44, %v460_v27 }
  0x7c   : > { %v419_v54 = vsel %vm413_vm12, %v416_v38, %v418_v40  ;;  %v554_v55 = vshll.u32 %v1941_v43, %v548_v9  ;;  %v555_v56 = vshrl.u32 %v1942_v45, %v2223_v39  ;;  %v557_v62 = vshll.u32 %v1942_v45, %v548_v9 }
  0x7d   : > { %v331_v46 = vsel %vm329_vm4, %v330_v36, %v328_v29  ;;  %v2241_v5 = vadd.s32 %v449_v35, %v440_v32  ;;  %v472_v61 = vadd.s32 %v471_v59, %v462_v42  ;;  %v558_v23 = vshrl.u32 %v1943_v47, %v2223_v39 }
  0x7e   : > { %v332_v52 = vclz %v331_v46  ;;  %v560_v28 = vshll.u32 %v1943_v47, %v548_v9  ;;  %v561_v22 = vshrl.u32 %v1944_v49, %v2223_v39  ;;  %v563_v51 = vshll.u32 %v1944_v49, %v548_v9 }
  0x7f   : > { %v564_v63 = vshrl.u32 %v1945_v58, %v2223_v39  ;;  %v473_v0 = vmul.u32 %v2140_v13, %v419_v54  ;;  %vm475_vm6 = vc.u32 %v2241_v5, %v2237_v53  ;;  %v476_v3 = vadd.s32 1, %v472_v61 }
  0x80   : > { %v1642_v57 = vadd.s32 4294967294, %v332_v52  ;;  %v551_v7 = vshll.u32 %v1940_v41, %v548_v9  ;;  %v552_v10 = vshrl.u32 %v1941_v43, %v2223_v39  ;;  %vm566_vm7 = vcmp.lt.s32.totalorder %v2233_v48, 1 }
  0x81   : > { %v2262_v21 = vor.u32 %v555_v56, %v554_v55  ;;  %v477_v25 = vsel %vm475_vm6, %v476_v3, %v472_v61  ;;  %v559_v26 = vor.u32 %v558_v23, %v557_v62  ;;  %v562_v13 = vor.u32 %v561_v22, %v560_v28 }
  0x82   : > { %vm1643_vm5 = vcmp.lt.s32.totalorder %v1642_v57, 0  ;;  %v565_v27 = vor.u32 %v564_v63, %v563_v51  ;;  %v478_v31 = vadd.s32 %v477_v25, %v473_v0  ;;  %vm569_vm8 = vcmp.lt.s32.totalorder %v2233_v48, 4 }
  0x83   : > { %v335_v6 = vsel %vm1643_vm5, 0, %v1642_v57  ;;  %vm228_vm9 = vcmp.lt.s32.totalorder %v2100_v15, 0  ;;  %v350_v9 = vsub.s32 4, %v2214_v4  ;;  %v542_v32 = vor.u32 8388608, %v541_v14 }
  0x84   : > { %v336_v11 = vsub.s32 32, %v335_v6  ;;  %v337_v12 = vshll.u32 %v328_v29, %v335_v6  ;;  %v340_v20 = vsub.s32 4294967266, %v335_v6  ;;  %v553_v8 = vor.u32 %v552_v10, %v551_v7 }
  0x85   : > { %v479_v34 = vadd.s32 536870912, %v478_v31  ;;  %vm568_vm10 = vcmp.lt.s32.totalorder %v2233_v48, 3  ;;  %vm567_vm11 = vcmp.lt.s32.totalorder %v2233_v48, 2  ;;  %v575_v36 = vsel %vm569_vm8, %v562_v13, 920167782 }
  0x86   : > { %v338_v1 = vshrl.u32 %v320_v50, %v336_v11  ;;  %v341_v30 = vadd.s32 127, %v340_v20  ;;  %v578_v37 = vsel %vm566_vm7, %v2262_v21, %v559_v26  ;;  %v579_v38 = vsel %vm569_vm8, %v565_v27, 1326507024 }
  0x87   : > { %vm2278_vm12 = vcmp.le.f32.partialorder %v226_v19, 0.7853982  ;;  %v2282_v46 = vshrl.u32 %v479_v34, 30  ;;  %v351_v35 = vsel %vm228_vm9, %v350_v9, %v2214_v4  ;;  %v574_v14 = vsel %vm566_vm7, %v553_v8, %v2262_v21 }
  0x88   : > { %v339_v33 = vor.u32 %v338_v1, %v337_v12  ;;  %v342_v29 = vshll.u32 %v341_v30, 23  ;;  %v580_v50 = vsel %vm568_vm10, %v562_v13, %v579_v38  ;;  %v2292_v52 = vshll.u32 %v542_v32, 8 }
  0x89   : > { %v481_v59 = vshll.u32 %v2282_v46, 30  ;;  %v576_v54 = vsel %vm568_vm10, %v559_v26, %v575_v36  ;;  %v581_v55 = vsel %vm567_vm11, %v578_v37, %v580_v50  ;;  %v2303_v23 = vsel %vm2278_vm12, 0, %v351_v35 }
  0x8a   : > { %v343_v42 = vor.u32 4788187, %v342_v29  ;;  %v346_v44 = vcvt.s32.f32 %v339_v33  ;;  %v583_v4 = vand.u32 65535, %v2292_v52  ;;  %v584_v56 = vshrl.u32 %v2292_v52, 16 }
  0x8b   : > { %v585_v57 = vand.u32 65535, %v581_v55  ;;  %v586_v61 = vshrl.u32 %v581_v55, 16  ;;  %v482_v28 = vsub.s32 %v478_v31, %v481_v59  ;;  %v577_v22 = vsel %vm567_vm11, %v574_v14, %v576_v54 }
  0x8c   : > { %v344_v19 = vand.u32 2147483647, %v343_v42  ;;  %v550_v7 = vshrl.u32 %v1940_v41, %v2223_v39  ;;  %v571_v10 = vsel %vm569_vm8, %v559_v26, 2102212464  ;;  %v607_v20 = vand.u32 65535, %v577_v22 }
  0x8d   : > { %v587_v51 = vmul.u32 %v585_v57, %v583_v4  ;;  %v2307_v63 = vmul.u32 %v586_v61, %v583_v4  ;;  %v2309_v0 = vmul.u32 %v585_v57, %v584_v56  ;;  %vm483_vm13 = vcmp.lt.s32.totalorder %v482_v28, 0 }
  0x8e   : > { %v347_v62 = vmul.f32 %v346_v44, %v344_v19  ;;  %v484_v6 = vsub.s32 0, %v482_v28  ;;  %v590_v27 = vmul.u32 %v586_v61, %v584_v56  ;;  %v608_v1 = vshrl.u32 %v577_v22, 16 }
  0x8f   : > { %v591_v11 = vshll.u32 %v2307_v63, 16  ;;  %v593_v12 = vshll.u32 %v2309_v0, 16  ;;  %v474_v9 = vadd.s32 %v2237_v53, %v2241_v5  ;;  %v2332_v29 = vand.u32 3, %v2303_v23 }
  0x90   : > { %v348_v3 = vxor.u32 2147483648, %v347_v62  ;;  %v485_v13 = vsel %vm483_vm13, %v484_v6, %v482_v28  ;;  %v2329_v33 = vmul.u32 %v608_v1, %v583_v4  ;;  %v570_v36 = vsel %vm566_vm7, %v550_v7, %v553_v8 }
  0x91   : > { %v486_v39 = vclz %v485_v13  ;;  %vm595_vm14 = vc.u32 %v587_v51, %v591_v11  ;;  %v597_v31 = vadd.s32 %v591_v11, %v587_v51  ;;  %v572_v40 = vsel %vm568_vm10, %v2262_v21, %v571_v10 }
  0x92   : > { %v349_v25 = vsel %vm228_vm9, %v348_v3, %v347_v62  ;;  %v596_v32 = vsel %vm595_vm14, 1, %v1946_v60  ;;  %v609_v42 = vmul.u32 %v607_v20, %v583_v4  ;;  %v2340_v44 = vmul.u32 %v607_v20, %v584_v56 }
  0x93   : > { %v2322_v30 = vsel %vm2278_vm12, %v2100_v15, %v349_v25  ;;  %v1645_v34 = vadd.s32 4294967294, %v486_v39  ;;  %vm599_vm15 = vc.u32 %v597_v31, %v593_v12  ;;  %v598_v53 = vadd.s32 %v596_v32, %v590_v27 }
  0x94   : > { %v354_v26 = vmul.f32 %v2322_v30, %v2322_v30  ;;  %v600_v5 = vsel %vm599_vm15, 1, %v1946_v60  ;;  %v613_v19 = vshll.u32 %v2329_v33, 16  ;;  %vm375_vm1 = vcmp.eq.s32.totalorder %v2332_v29, 2 }
  0x95   : > { %vm1646_vm0 = vcmp.lt.s32.totalorder %v1645_v34, 0  ;;  %v2346_v21 = vsel %vm567_vm11, %v570_v36, %v572_v40  ;;  %v612_v4 = vmul.u32 %v608_v1, %v584_v56  ;;  %vm372_vm2 = vcmp.eq.s32.totalorder %v2332_v29, 0 }
  0x96   : > { %v355_v37 = vmul.f32 -0.001358992, %v354_v26  ;;  %v362_v38 = vmul.f32 -0.00019511016, %v354_v26  ;;  %v489_v50 = vsel %vm1646_vm0, 0, %v1645_v34  ;;  %v592_v22 = vshrl.u32 %v2307_v63, 16 }
  0x97   : > { %v490_v8 = vsub.s32 32, %v489_v50  ;;  %v491_v59 = vshll.u32 %v482_v28, %v489_v50  ;;  %v494_v54 = vsub.s32 4294967266, %v489_v50  ;;  %v602_v51 = vadd.s32 %v600_v5, %v598_v53 }
  0x98   : > { %v356_v35 = vadd.f32 0.041655596, %v355_v37  ;;  %v363_v14 = vadd.f32 0.008332121, %v362_v38  ;;  %vm382_vm3 = vcmp.lt.s32.totalorder %v2102_v16, 0  ;;  %v615_v28 = vshll.u32 %v2340_v44, 16 }
  0x99   : > { %v492_v61 = vshrl.u32 %v474_v9, %v490_v8  ;;  %v495_v62 = vadd.s32 127, %v494_v54  ;;  %vm617_vm4 = vc.u32 %v609_v42, %v613_v19  ;;  %vm2354_vm5 = vcmp.le.f32.partialorder %v380_v24, 0.7853982 }
  0x9a   : > { %v357_v55 = vmul.f32 %v356_v35, %v354_v26  ;;  %v364_v57 = vmul.f32 %v363_v14, %v354_v26  ;;  %v594_v10 = vshrl.u32 %v2309_v0, 16  ;;  %v618_v63 = vsel %vm617_vm4, 1, %v1946_v60 }
  0x9b   : > { %v493_v56 = vor.u32 %v492_v61, %v491_v59  ;;  %v496_v7 = vshll.u32 %v495_v62, 23  ;;  %v619_v20 = vadd.s32 %v613_v19, %v609_v42  ;;  %v620_v25 = vadd.s32 %v618_v63, %v612_v4 }
  0x9c   : > { %v358_v3 = vadd.f32 -0.4999988, %v357_v55  ;;  %v365_v6 = vadd.f32 -0.16666654, %v364_v57  ;;  %v603_v1 = vadd.s32 %v602_v51, %v592_v22  ;;  %v691_v39 = vand.u32 2139095040, %v2106_v18 }
  0x9d   : > { %v497_v13 = vor.u32 4788187, %v496_v7  ;;  %v500_v27 = vcvt.s32.f32 %v493_v56  ;;  %v614_v9 = vshrl.u32 %v2329_v33, 16  ;;  %vm621_vm6 = vc.u32 %v619_v20, %v615_v28 }
  0x9e   : > { %v359_v11 = vmul.f32 %v358_v3, %v354_v26  ;;  %v366_v12 = vmul.f32 %v365_v6, %v354_v26  ;;  %v504_v0 = vsub.s32 4, %v2282_v46  ;;  %v622_v34 = vsel %vm621_vm6, 1, %v1946_v60 }
  0x9f   : > { %v498_v32 = vand.u32 2147483647, %v497_v13  ;;  %v692_v36 = vshrl.u32 %v691_v39, 23  ;;  %v616_v38 = vshrl.u32 %v2340_v44, 16  ;;  %v624_v40 = vadd.s32 %v622_v34, %v620_v25 }
  0xa0   : > { %v2361_v31 = vadd.f32 1.0, %v359_v11  ;;  %v367_v24 = vadd.f32 1.0, %v366_v12  ;;  %v2371_v53 = vadd.s32 %v603_v1, %v594_v10  ;;  %v2373_v5 = vadd.s32 %v619_v20, %v615_v28 }
  0xa1   : > { %v501_v42 = vmul.f32 %v500_v27, %v498_v32  ;;  %v1650_v33 = vadd.s32 4294967169, %v692_v36  ;;  %vm371_vm7 = vcmp.lt.s32.totalorder %v2332_v29, 2  ;;  %v625_v14 = vadd.s32 %v624_v40, %v614_v9 }
  0xa2   : > { %v2367_v26 = vmul.f32 %v367_v24, %v2322_v30  ;;  %v376_v37 = vxor.u32 2147483648, %v2361_v31  ;;  %vm369_vm8 = vweird.f32 %v2100_v15  ;;  %v688_v50 = vand.u32 2147483647, %v2106_v18 }
  0xa3   : > { %v502_v44 = vxor.u32 2147483648, %v501_v42  ;;  %v698_v19 = vadd.s32 1, %v1650_v33  ;;  %v505_v59 = vsel %vm382_vm3, %v504_v0, %v2282_v46  ;;  %v626_v54 = vadd.s32 %v625_v14, %v616_v38 }
  0xa4   : > { %v373_v35 = vxor.u32 2147483648, %v2367_v26  ;;  %v377_v30 = vsel %vm375_vm1, %v376_v37, %v2367_v26  ;;  %v627_v55 = vmul.u32 %v2292_v52, %v2346_v21  ;;  %vm629_vm9 = vc.u32 %v2371_v53, %v2373_v5 }
  0xa5   : > { %v503_v4 = vsel %vm382_vm3, %v502_v44, %v501_v42  ;;  %vm699_vm10 = vcmp.gt.s32.totalorder %v698_v19, 0  ;;  %v630_v46 = vadd.s32 1, %v626_v54  ;;  %v2405_v21 = vsel %vm2354_vm5, 0, %v505_v59 }
  0xa6   : > { %v374_v8 = vsel %vm372_vm2, %v2361_v31, %v373_v35  ;;  %v506_v61 = vsel %vm2354_vm5, %v2102_v16, %v503_v4  ;;  %v700_v62 = vsel %vm699_vm10, %v698_v19, 0  ;;  %v2408_v56 = vand.u32 3, %v2405_v21 }
  0xa7   : > { %v378_v57 = vsel %vm371_vm7, %v374_v8, %v377_v30  ;;  %v508_v22 = vmul.f32 %v506_v61, %v506_v61  ;;  %v702_v51 = vand.u32 31, %v700_v62  ;;  %v631_v52 = vsel %vm629_vm9, %v630_v46, %v626_v54 }
  0xa8   : > { %v379_v29 = vsel %vm369_vm8, nan, %v378_v57  ;;  %v632_v28 = vadd.s32 %v631_v52, %v627_v55  ;;  %v695_v7 = vand.u32 8388607, %v688_v50  ;;  %v2414_v20 = vshrl.u32 %v700_v62, 5 }
  0xa9   : > { %842 = vst [vmem:[#allocation2 + $0x10] sm:$0xff] %v379_v29  ;;  %v509_v3 = vmul.f32 -0.001358992, %v508_v22  ;;  %v516_v6 = vmul.f32 -0.00019511016, %v508_v22  ;;  %v2412_v10 = vsub.s32 32, %v702_v51  ;;  %v705_v48 = vshll.u32 %v1940_v41, %v702_v51 }
  0xaa   : > { %v633_v12 = vadd.s32 536870912, %v632_v28  ;;  %v708_v13 = vshll.u32 %v1941_v43, %v702_v51  ;;  %vm526_vm11 = vcmp.eq.s32.totalorder %v2408_v56, 0  ;;  %v711_v9 = vshll.u32 %v1942_v45, %v702_v51 }
  0xab   : > { %v510_v63 = vadd.f32 0.041655596, %v509_v3  ;;  %v517_v11 = vadd.f32 0.008332121, %v516_v6  ;;  %v706_v25 = vshrl.u32 %v1941_v43, %v2412_v10  ;;  %v709_v24 = vshrl.u32 %v1942_v45, %v2412_v10 }
  0xac   : > { %v2420_v39 = vshrl.u32 %v633_v12, 30  ;;  %v712_v32 = vshrl.u32 %v1943_v47, %v2412_v10  ;;  %v714_v0 = vshll.u32 %v1943_v47, %v702_v51  ;;  %v715_v34 = vshrl.u32 %v1944_v49, %v2412_v10 }
  0xad   : > { %v511_v27 = vmul.f32 %v510_v63, %v508_v22  ;;  %v518_v1 = vmul.f32 %v517_v11, %v508_v22  ;;  %vm529_vm12 = vcmp.eq.s32.totalorder %v2408_v56, 2  ;;  %v696_v40 = vor.u32 8388608, %v695_v7 }
  0xae   : > { %v635_v38 = vshll.u32 %v2420_v39, 30  ;;  %v2433_v42 = vor.u32 %v706_v25, %v705_v48  ;;  %v717_v33 = vshll.u32 %v1944_v49, %v702_v51  ;;  %v718_v45 = vshrl.u32 %v1945_v58, %v2412_v10 }
  0xaf   : > { %v512_v43 = vadd.f32 -0.4999988, %v511_v27  ;;  %v519_v36 = vadd.f32 -0.16666654, %v518_v1  ;;  %v2438_v44 = vor.u32 %v709_v24, %v708_v13  ;;  %v2440_v19 = vor.u32 %v712_v32, %v711_v9 }
  0xb0   : > { %v636_v47 = vsub.s32 %v632_v28, %v635_v38  ;;  %v716_v8 = vor.u32 %v715_v34, %v714_v0  ;;  %v719_v59 = vor.u32 %v718_v45, %v717_v33  ;;  %vm720_vm13 = vcmp.lt.s32.totalorder %v2414_v20, 1 }
  0xb1   : > { %v513_v30 = vmul.f32 %v512_v43, %v508_v22  ;;  %v520_v14 = vmul.f32 %v519_v36, %v508_v22  ;;  %vm721_vm15 = vcmp.lt.s32.totalorder %v2414_v20, 2  ;;  %vm722_vm0 = vcmp.lt.s32.totalorder %v2414_v20, 3 }
  0xb2   : > { %vm637_vm14 = vcmp.lt.s32.totalorder %v636_v47, 0  ;;  %v638_v57 = vsub.s32 0, %v636_v47  ;;  %vm723_vm1 = vcmp.lt.s32.totalorder %v2414_v20, 4  ;;  %v2448_v49 = vshll.u32 %v696_v40, 8 }
  0xb3   : > { %v2443_v54 = vadd.f32 1.0, %v513_v30  ;;  %v521_v55 = vadd.f32 1.0, %v520_v14  ;;  %v728_v46 = vsel %vm720_vm13, %v2433_v42, %v2438_v44  ;;  %v729_v22 = vsel %vm723_vm1, %v716_v8, 920167782 }
  0xb4   : > { %v639_v29 = vsel %vm637_vm14, %v638_v57, %v636_v47  ;;  %v732_v51 = vsel %vm720_vm13, %v2438_v44, %v2440_v19  ;;  %vm525_vm2 = vcmp.lt.s32.totalorder %v2408_v56, 2  ;;  %v730_v6 = vsel %vm722_vm0, %v2440_v19, %v729_v22 }
  0xb5   : > { %v2450_v58 = vmul.f32 %v521_v55, %v506_v61  ;;  %v530_v4 = vxor.u32 2147483648, %v2443_v54  ;;  %v640_v62 = vclz %v639_v29  ;;  %v733_v61 = vsel %vm723_vm1, %v719_v59, 1326507024 }
  0xb6   : > { %vm523_vm3 = vweird.f32 %v2102_v16  ;;  %v731_v7 = vsel %vm721_vm15, %v728_v46, %v730_v6  ;;  %v734_v63 = vsel %vm722_vm0, %v716_v8, %v733_v61  ;;  %v628_v12 = vadd.s32 %v2373_v5, %v2371_v53 }
  0xb7   : > { %v527_v52 = vxor.u32 2147483648, %v2450_v58  ;;  %v531_v3 = vsel %vm529_vm12, %v530_v4, %v2450_v58  ;;  %v1648_v28 = vadd.s32 4294967294, %v640_v62  ;;  %v735_v48 = vsel %vm721_vm15, %v732_v51, %v734_v63 }
  0xb8   : > { %v737_v25 = vand.u32 65535, %v2448_v49  ;;  %v738_v27 = vshrl.u32 %v2448_v49, 16  ;;  %v762_v1 = vshrl.u32 %v731_v7, 16  ;;  %v739_v32 = vand.u32 65535, %v735_v48 }
  0xb9   : > { %v528_v11 = vsel %vm526_vm11, %v2443_v54, %v527_v52  ;;  %vm1649_vm4 = vcmp.lt.s32.totalorder %v1648_v28, 0  ;;  %v740_v56 = vshrl.u32 %v735_v48, 16  ;;  %v761_v53 = vand.u32 65535, %v731_v7 }
  0xba   : > { %v532_v13 = vsel %vm525_vm2, %v528_v11, %v531_v3  ;;  %v643_v9 = vsel %vm1649_vm4, 0, %v1648_v28  ;;  %v741_v5 = vmul.u32 %v739_v32, %v737_v25  ;;  %v743_v33 = vmul.u32 %v739_v32, %v738_v27 }
  0xbb   : > { %v533_v24 = vsel %vm523_vm3, nan, %v532_v13  ;;  %v644_v0 = vsub.s32 32, %v643_v9  ;;  %v645_v34 = vshll.u32 %v636_v47, %v643_v9  ;;  %v648_v43 = vsub.s32 4294967266, %v643_v9 }
  0xbc   : > { %843 = vst [vmem:[#allocation2] sm:$0xff] %v533_v24  ;;  %v742_v36 = vmul.u32 %v740_v56, %v737_v25  ;;  %v744_v45 = vmul.u32 %v740_v56, %v738_v27  ;;  %v764_v14 = vmul.u32 %v762_v1, %v737_v25  ;;  %v747_v55 = vshll.u32 %v743_v33, 16 }
  0xbd   : > { %v646_v38 = vshrl.u32 %v628_v12, %v644_v0  ;;  %v649_v40 = vadd.s32 127, %v648_v43  ;;  %v763_v57 = vmul.u32 %v761_v53, %v737_v25  ;;  %v765_v46 = vmul.u32 %v761_v53, %v738_v27 }
  0xbe   : > { %v745_v30 = vshll.u32 %v742_v36, 16  ;;  %v766_v62 = vmul.u32 %v762_v1, %v738_v27  ;;  %v767_v61 = vshll.u32 %v764_v14, 16  ;;  %v746_v3 = vshrl.u32 %v742_v36, 16 }
  0xbf   : > { %v647_v8 = vor.u32 %v646_v38, %v645_v34  ;;  %v650_v59 = vshll.u32 %v649_v40, 23  ;;  %v769_v28 = vshll.u32 %v765_v46, 16  ;;  %v704_v63 = vshrl.u32 %v1940_v41, %v2412_v10 }
  0xc0   : > { %vm749_vm5 = vc.u32 %v741_v5, %v745_v30  ;;  %v751_v29 = vadd.s32 %v745_v30, %v741_v5  ;;  %vm771_vm7 = vc.u32 %v763_v57, %v767_v61  ;;  %v725_v12 = vsel %vm723_vm1, %v2440_v19, 2102212464 }
  0xc1   : > { %v651_v47 = vor.u32 4788187, %v650_v59  ;;  %v654_v22 = vcvt.s32.f32 %v647_v8  ;;  %v750_v51 = vsel %vm749_vm5, 1, %v1946_v60  ;;  %v772_v25 = vsel %vm771_vm7, 1, %v1946_v60 }
  0xc2   : > { %v752_v6 = vadd.s32 %v750_v51, %v744_v45  ;;  %vm753_vm6 = vc.u32 %v751_v29, %v747_v55  ;;  %v773_v13 = vadd.s32 %v767_v61, %v763_v57  ;;  %vm536_vm9 = vcmp.lt.s32.totalorder %v2104_v17, 0 }
  0xc3   : > { %v652_v7 = vand.u32 2147483647, %v651_v47  ;;  %v754_v11 = vsel %vm753_vm6, 1, %v1946_v60  ;;  %v748_v1 = vshrl.u32 %v743_v33, 16  ;;  %v774_v24 = vadd.s32 %v772_v25, %v766_v62 }
  0xc4   : > { %v756_v48 = vadd.s32 %v754_v11, %v752_v6  ;;  %vm2504_vm10 = vcmp.le.f32.partialorder %v534_v2, 0.7853982  ;;  %v768_v9 = vshrl.u32 %v764_v14, 16  ;;  %vm775_vm11 = vc.u32 %v773_v13, %v769_v28 }
  0xc5   : > { %v655_v27 = vmul.f32 %v654_v22, %v652_v7  ;;  %v724_v19 = vsel %vm720_vm13, %v704_v63, %v2433_v42  ;;  %v726_v56 = vsel %vm722_vm0, %v2438_v44, %v725_v12  ;;  %v776_v0 = vsel %vm775_vm11, 1, %v1946_v60 }
  0xc6   : > { %v757_v10 = vadd.s32 %v756_v48, %v746_v3  ;;  %v770_v34 = vshrl.u32 %v765_v46, 16  ;;  %v778_v43 = vadd.s32 %v776_v0, %v774_v24  ;;  %v777_v5 = vadd.s32 %v773_v13, %v769_v28 }
  0xc7   : > { %v656_v32 = vxor.u32 2147483648, %v655_v27  ;;  %v727_v42 = vsel %vm721_vm15, %v724_v19, %v726_v56  ;;  %v658_v44 = vsub.s32 4, %v2420_v39  ;;  %vm677_vm1 = vweird.f32 %v2104_v17 }
  0xc8   : > { %v758_v53 = vadd.s32 %v757_v10, %v748_v1  ;;  %v779_v38 = vadd.s32 %v778_v43, %v768_v9  ;;  %v781_v30 = vmul.u32 %v2448_v49, %v727_v42  ;;  %v1145_v19 = vadd.s32 3, %v2405_v21 }
  0xc9   : > { %v657_v2 = vsel %vm536_vm9, %v656_v32, %v655_v27  ;;  %v659_v55 = vsel %vm536_vm9, %v658_v44, %v2420_v39  ;;  %v990_v32 = vadd.s32 3, %v2303_v23 }
  0xca   : > { %v660_v36 = vsel %vm2504_vm10, %v2104_v17, %v657_v2  ;;  %v780_v33 = vadd.s32 %v779_v38, %v770_v34  ;;  %vm783_vm12 = vc.u32 %v758_v53, %v777_v5  ;;  %v661_v62 = vsel %vm2504_vm10, 0, %v659_v55 }
  0xcb   : > { %v662_v40 = vmul.f32 %v660_v36, %v660_v36  ;;  %v678_v61 = vand.u32 3, %v661_v62  ;;  %v1300_v56 = vadd.s32 3, %v661_v62  ;;  %v782_v0 = vadd.s32 %v777_v5, %v758_v53 }
  0xcc   : > { %v784_v14 = vadd.s32 1, %v780_v33  ;;  %v991_v43 = vand.u32 3, %v990_v32  ;;  %v1146_v2 = vand.u32 3, %v1145_v19 }
  0xcd   : > { %v663_v60 = vmul.f32 -0.001358992, %v662_v40  ;;  %v670_v45 = vmul.f32 -0.00019511016, %v662_v40  ;;  %vm683_vm13 = vcmp.eq.s32.totalorder %v678_v61, 2  ;;  %vm679_vm14 = vcmp.lt.s32.totalorder %v678_v61, 2 }
  0xce   : > { %v785_v57 = vsel %vm783_vm12, %v784_v14, %v780_v33  ;;  %vm680_vm15 = vcmp.eq.s32.totalorder %v678_v61, 0  ;;  %vm993_vm4 = vcmp.eq.s32.totalorder %v991_v43, 0  ;;  %vm996_vm5 = vcmp.eq.s32.totalorder %v991_v43, 2 }
  0xcf   : > { %v664_v8 = vadd.f32 0.041655596, %v663_v60  ;;  %v671_v59 = vadd.f32 0.008332121, %v670_v45  ;;  %v786_v46 = vadd.s32 %v785_v57, %v781_v30  ;;  %vm992_vm6 = vcmp.lt.s32.totalorder %v991_v43, 2 }
  0xd0   : > { %v995_v23 = vsel %vm993_vm4, %v2361_v31, %v373_v35  ;;  %v998_v21 = vsel %vm996_vm5, %v376_v37, %v2367_v26  ;;  %vm1147_vm7 = vcmp.lt.s32.totalorder %v1146_v2, 2  ;;  %vm1148_vm9 = vcmp.eq.s32.totalorder %v1146_v2, 0 }
  0xd1   : > { %v665_v20 = vmul.f32 %v664_v8, %v662_v40  ;;  %v672_v29 = vmul.f32 %v671_v59, %v662_v40  ;;  %v787_v51 = vadd.s32 536870912, %v786_v46  ;;  %vm1151_vm10 = vcmp.eq.s32.totalorder %v1146_v2, 2 }
  0xd2   : > { %v999_v60 = vsel %vm992_vm6, %v995_v23, %v998_v21  ;;  %v1150_v45 = vsel %vm1148_vm9, %v2443_v54, %v527_v52  ;;  %v1153_v35 = vsel %vm1151_vm10, %v530_v4, %v2450_v58  ;;  %vm831_vm5 = vweird.f32 %v2106_v18 }
  0xd3   : > { %v666_v47 = vadd.f32 -0.4999988, %v665_v20  ;;  %v673_v22 = vadd.f32 -0.16666654, %v672_v29  ;;  %v2529_v6 = vshrl.u32 %v787_v51, 30  ;;  %v1000_v30 = vsel %vm369_vm8, nan, %v999_v60 }
  0xd4   : > { %v1154_v37 = vsel %vm1147_vm7, %v1150_v45, %v1153_v35  ;;  %1466 = vst [vmem:[#allocation3] sm:$0xff] %v1000_v30  ;;  %vm690_vm8 = vcmp.lt.s32.totalorder %v2106_v18, 0 }
  0xd5   : > { %v667_v49 = vmul.f32 %v666_v47, %v662_v40  ;;  %v674_v3 = vmul.f32 %v673_v22, %v662_v40  ;;  %v789_v63 = vshll.u32 %v2529_v6, 30  ;;  %v1301_v40 = vand.u32 3, %v1300_v56 }
  0xd6   : > { %v1155_v8 = vsel %vm523_vm3, nan, %v1154_v37  ;;  %v812_v58 = vsub.s32 4, %v2529_v6 }
  0xd7   : > { %v668_v28 = vadd.f32 1.0, %v667_v49  ;;  %v675_v7 = vadd.f32 1.0, %v674_v3  ;;  %v790_v12 = vsub.s32 %v786_v46, %v789_v63  ;;  %vm1302_vm11 = vcmp.lt.s32.totalorder %v1301_v40, 2  ;;  %1467 = vst [vmem:[#allocation3 + $0x18] sm:$0xff] %v1155_v8 }
  0xd8   : > { %vm1303_vm12 = vcmp.eq.s32.totalorder %v1301_v40, 0  ;;  %v813_v57 = vsel %vm690_vm8, %v812_v58, %v2529_v6 }
  0xd9   : > { %v676_v39 = vmul.f32 %v675_v7, %v660_v36  ;;  %v684_v11 = vxor.u32 2147483648, %v668_v28  ;;  %vm791_vm0 = vcmp.lt.s32.totalorder %v790_v12, 0  ;;  %v792_v13 = vsub.s32 0, %v790_v12 }
  0xdb   : > { %v681_v48 = vxor.u32 2147483648, %v676_v39  ;;  %v685_v25 = vsel %vm683_vm13, %v684_v11, %v676_v39  ;;  %v793_v1 = vsel %vm791_vm0, %v792_v13, %v790_v12  ;;  %vm1306_vm13 = vcmp.eq.s32.totalorder %v1301_v40, 2 }
  0xdc   : > { %v794_v41 = vclz %v793_v1  ;;  %v1308_v52 = vsel %vm1306_vm13, %v684_v11, %v676_v39 }
  0xdd   : > { %v682_v27 = vsel %vm680_vm15, %v668_v28, %v681_v48  ;;  %v1305_v14 = vsel %vm1303_vm12, %v668_v28, %v681_v48 }
  0xde   : > { %v686_v24 = vsel %vm679_vm14, %v682_v27, %v685_v25  ;;  %v1651_v9 = vadd.s32 4294967294, %v794_v41  ;;  %v1309_v15 = vsel %vm1302_vm11, %v1305_v14, %v1308_v52  ;;  %vm689_vm14 = vcmp.le.f32.partialorder %v688_v50, 0.7853982 }
  0xdf   : > { %v687_v10 = vsel %vm677_vm1, nan, %v686_v24  ;;  %v1310_v54 = vsel %vm677_vm1, nan, %v1309_v15  ;;  %v815_v46 = vsel %vm689_vm14, 0, %v813_v57 }
  0xe0   : > { %844 = vst [vmem:[#allocation2 + $0x18] sm:$0xff] %v687_v10  ;;  %vm1652_vm2 = vcmp.lt.s32.totalorder %v1651_v9, 0  ;;  %v1455_v51 = vadd.s32 3, %v815_v46  ;;  %v832_v7 = vand.u32 3, %v815_v46 }
  0xe1   : > { %v797_v34 = vsel %vm1652_vm2, 0, %v1651_v9  ;;  %1468 = vst [vmem:[#allocation3 + $0x8] sm:$0xff] %v1310_v54 }
  0xe2   : > { %v798_v36 = vsub.s32 32, %v797_v34  ;;  %v799_v42 = vshll.u32 %v790_v12, %v797_v34  ;;  %v802_v38 = vsub.s32 4294967266, %v797_v34  ;;  %v1456_v63 = vand.u32 3, %v1455_v51 }
  0xe3   : > { %vm837_vm3 = vcmp.eq.s32.totalorder %v832_v7, 2  ;;  %vm833_vm0 = vcmp.lt.s32.totalorder %v832_v7, 2  ;;  %vm834_vm1 = vcmp.eq.s32.totalorder %v832_v7, 0 }
  0xe4   : > { %v800_v44 = vshrl.u32 %v782_v0, %v798_v36  ;;  %v803_v33 = vadd.s32 127, %v802_v38  ;;  %vm1461_vm15 = vcmp.eq.s32.totalorder %v1456_v63, 2  ;;  %vm1458_vm2 = vcmp.eq.s32.totalorder %v1456_v63, 0 }
  0xe5   : > { %vm1457_vm4 = vcmp.lt.s32.totalorder %v1456_v63, 2 }
  0xe6   : > { %v801_v53 = vor.u32 %v800_v44, %v799_v42  ;;  %v804_v5 = vshll.u32 %v803_v33, 23 }
  0xe8   : > { %v805_v31 = vor.u32 4788187, %v804_v5  ;;  %v808_v26 = vcvt.s32.f32 %v801_v53 }
  0xea   : > { %v806_v59 = vand.u32 2147483647, %v805_v31 }
  0xec   : > { %v809_v55 = vmul.f32 %v808_v26, %v806_v59 }
  0xee   : > { %v810_v4 = vxor.u32 2147483648, %v809_v55 }
  0xf0   : > { %v811_v16 = vsel %vm690_vm8, %v810_v4, %v809_v55 }
  0xf1   : > { %v814_v20 = vsel %vm689_vm14, %v2106_v18, %v811_v16 }
  0xf2   : > { %v816_v29 = vmul.f32 %v814_v20, %v814_v20 }
  0xf4   : > { %v817_v62 = vmul.f32 -0.001358992, %v816_v29  ;;  %v824_v47 = vmul.f32 -0.00019511016, %v816_v29 }
  0xf6   : > { %v818_v17 = vadd.f32 0.041655596, %v817_v62  ;;  %v825_v22 = vadd.f32 0.008332121, %v824_v47 }
  0xf8   : > { %v819_v61 = vmul.f32 %v818_v17, %v816_v29  ;;  %v826_v49 = vmul.f32 %v825_v22, %v816_v29 }
  0xfa   : > { %v820_v3 = vadd.f32 -0.4999988, %v819_v61  ;;  %v827_v28 = vadd.f32 -0.16666654, %v826_v49 }
  0xfc   : > { %v821_v50 = vmul.f32 %v820_v3, %v816_v29  ;;  %v828_v39 = vmul.f32 %v827_v28, %v816_v29 }
  0xfe   : > { %v822_v11 = vadd.f32 1.0, %v821_v50  ;;  %v829_v12 = vadd.f32 1.0, %v828_v39 }
 0x100   : > { %v830_v6 = vmul.f32 %v829_v12, %v814_v20  ;;  %v838_v48 = vxor.u32 2147483648, %v822_v11 }
 0x102   : > { %v835_v25 = vxor.u32 2147483648, %v830_v6  ;;  %v839_v13 = vsel %vm837_vm3, %v838_v48, %v830_v6  ;;  %v1463_v27 = vsel %vm1461_vm15, %v838_v48, %v830_v6 }
 0x104   : > { %v836_v1 = vsel %vm834_vm1, %v822_v11, %v835_v25  ;;  %v1460_v24 = vsel %vm1458_vm2, %v822_v11, %v835_v25 }
 0x105   : > { %v840_v41 = vsel %vm833_vm0, %v836_v1, %v839_v13  ;;  %v1464_v10 = vsel %vm1457_vm4, %v1460_v24, %v1463_v27 }
 0x106   : > { %v841_v9 = vsel %vm831_vm5, nan, %v840_v41  ;;  %v1465_v32 = vsel %vm831_vm5, nan, %v1464_v10 }
 0x107   : > { %845 = vst [vmem:[#allocation2 + $0x8] sm:$0xff] %v841_v9 }
 0x108   : > { %1469 = vst [vmem:[#allocation3 + $0x10] sm:$0xff] %v1465_v32 }
 0x109 PF: > { %v1472_v19 = vld [vmem:[%s2090_s24 + $0x10] sm:$0xff]  ;;  %v1470_v56 = vld [vmem:[%s2090_s24] sm:$0xff]  ;;  %s1947_s20 = smov 64   ;;  %v1473_v18 = vld [vmem:[%s2090_s24 + $0x18] sm:$0xff]  ;;  %s1666_s22 = sshll.u32 %s1923_s13, 2 }
 0x10a   : > { %1478 = vrot.lane.b32.xlu1 %v1472_v19, %s1947_s20  ;;  %1474 = vrot.lane.b32.xlu0 %v1470_v56, %s1947_s20  ;;  %v1471_v0 = vld [vmem:[%s2090_s24 + $0x8] sm:$0xff]  ;;  %v1484_v34 = vld [vmem:[#allocation2 + $0x18] sm:$0xff]  ;;  %s1667_s23 = sshll.u32 %s1919_s12, 4  ;;  %v1490_v36 = vld [vmem:[#allocation3] sm:$0xff]  ;;  %s2650_s4 = sld [smem:[#allocation20_spill]] }
 0x10b   : > { %v1482_v43 = vld [vmem:[#allocation2 + $0x10] sm:$0xff]  ;;  %v1492_v2 = vld [vmem:[#allocation3 + $0x8] sm:$0xff]  ;;  %v1488_v42 = vmul.f32 %v1484_v34, %v1472_v19  ;;  %s1518_s28 = sadd.s32 %s1667_s23, %s1666_s22  ;;  %v1483_v60 = vld [vmem:[#allocation2] sm:$0xff]  ;;  %s1521_s8 = sshll.u32 %s2096_s2, 4  ;;  %s1522_s8 = int_to_ptr.vmem [resolvable:$true] %s1521_s8 }
 0x10c   : > { %v1486_v38 = vmul.f32 %v1482_v43, %v1470_v56  ;;  %s1668_s3 = sshll.u32 %s1518_s28, 3  ;;  %v1491_v30 = vld [vmem:[#allocation3 + $0x18] sm:$0xff]  ;;  %v1487_v31 = vmul.f32 %v1483_v60, %v1471_v0  ;;  %s1507_s18 = scalar_lea.sflag [#allocation6], %s2086_s0 }
 0x10e   : > { %v1485_v5 = vld [vmem:[#allocation2 + $0x8] sm:$0xff] }
 0x10f   : > { %v1493_v45 = vld [vmem:[#allocation3 + $0x10] sm:$0xff]  ;;  %v1489_v35 = vmul.f32 %v1485_v5, %v1473_v18 }
 0x110   : > { %s1520_s6 = scalar_lea.hbm %s2650_s4, %s1668_s3  ;;  %s1853_s29 = scalar_lea.hbm %s2650_s4, 256 }
 0x111   : > { %s1523_s17 = sshll.u32 %s1520_s6, 4  ;;  %s1524_s17 = int_to_ptr.hbm [resolvable:$true] %s1523_s17 }
 0x112   : > { %1480 = vrot.lane.b32.xlu1 %v1473_v18, %s1947_s20  ;;  %1476 = vrot.lane.b32.xlu0 %v1471_v0, %s1947_s20  ;;  %s1847_s21 = sshra.s32 %s1524_s17, 4  ;;  %s1848_s21 = int_to_ptr.hbm [resolvable:$true] %s1847_s21 }
 0x113   : > { %s1849_s25 = scalar_lea.hbm %s1848_s21, 32  ;;  %p1854_p12 = scmp.lt.s32.totalorder %s1848_s21, %s2650_s4 }
 0x114   : > { %p1850_p3 = scmp.ne.s32.totalorder %s1848_s21, %s1849_s25  ;;  %p1855_p13 = scmp.lt.s32.totalorder %s1853_s29, %s1849_s25 }
 0x116   : > { %p1851_p7 = pnand %p1850_p3, %p2027_p8  ;;  %p1856_p0 = por %p1855_p13, %p1854_p12 }
 0x118   : > { %p1852_p11 = pneg %p1851_p7 }
 0x11a   : > { %p1857_p1 = pnand %p1856_p0, %p1852_p11 }
 0x17c   : > { %v1479_v40 = vpop.permute.xlu1 %1478  ;;  %v1475_v44 = vpop.permute.xlu0 %1474 }
 0x17d   : > { %v1496_v33 = vmul.f32 %v1492_v2, %v1479_v40  ;;  %v1494_v23 = vmul.f32 %v1490_v36, %v1475_v44 }
 0x17f   : > { %v1500_v21 = vadd.f32 %v1496_v33, %v1488_v42  ;;  %v1498_v53 = vadd.f32 %v1494_v23, %v1486_v38 }
 0x181   : > { %1504 = vst [vmem:[%s2096_s2 + $0x10] sm:$0xff] %v1500_v21 }
 0x182   : > { %1502 = vst [vmem:[%s2096_s2] sm:$0xff] %v1498_v53 }
 0x184   : > { %v1481_v26 = vpop.permute.xlu1 %1480  ;;  %v1477_v37 = vpop.permute.xlu0 %1476 }
 0x185   : > { %v1497_v14 = vmul.f32 %v1493_v45, %v1481_v26  ;;  %v1495_v8 = vmul.f32 %v1491_v30, %v1477_v37 }
 0x187   : > { %v1501_v59 = vadd.f32 %v1497_v14, %v1489_v35  ;;  %v1499_v52 = vadd.f32 %v1495_v8, %v1487_v31 }
 0x189   : > { %1505 = vst [vmem:[%s2096_s2 + $0x18] sm:$0xff] %v1501_v59 }
 0x18a   : > { %1503 = vst [vmem:[%s2096_s2 + $0x8] sm:$0xff] %v1499_v52 }
 0x18b   : > { %1860 = shalt.err (!%p1857_p1)
}
 0x18c   : > { %s1948_s0 = smov 128   ;;  %s1949_s19 = smov 8  }
 0x18d   : > { %1677 = dma.vmem_to_hbm [thread:$0]  (%p2027_p8), %s1522_s8, 512, %s1524_s17, %s1507_s18, %s1948_s0, %s1948_s0, %s1949_s19  }
 0x18e PF: > { %s2652_s24 = sld [smem:[#allocation15_spill]] }
 0x18f   : > { %s2653_s2 = sld [smem:[#allocation13_spill]] }
 0x194   : > { %p1694_p2 = scmp.ge.s32.totalorder %s2652_s24, 2 }
 0x195   : > { %s1538_s20 = sand.u32 1, %s2653_s2  }
 0x196   : > { %p1688_p4 = pnand %p1694_p2, %p2031_p9  ;;  %s1539_s22 = scalar_lea.sflag [#allocation6], %s1538_s20 }
 0x198   : > { %p1689_p6 = pneg %p1688_p4 }
 0x19a   : > { %1902 = dma.done.wait (%p1689_p6), %s1539_s22, 512  }
 0x19b   : > { %1904 = vsyncadd (%p1689_p6), %s1539_s22, 4294966784  ;;  %s19_s16 = sadd.s32 1, %s2652_s24   ;;  %s2655_s12 = sld [smem:[#allocation14_spill]] }
 0x19c   : > { %p16_p5 = scmp.ge.s32.totalorder %s19_s16, 10   ;;  %s2656_s23 = sld [smem:[#allocation18_spill]] }
 0x19d   : > { %s2657_s9 = smov %s1911_s10  ;;  %s2658_s10 = smov %s1915_s11 }
 0x19e   : > { %s2659_s11 = smov %s2075_s14  ;;  %s2660_s13 = smov %s1931_s15 }
 0x19f   : > { %s2662_s15 = smov %s2668_s5  ;;  %18 = sbr.rel (!%p16_p5) target bundleno = 11 (0xb), region = 82 }
 0x1a2   : > { %s2661_s14 = smov %s2656_s23 }
 0x1a4   :  { %1545 = vsyncpa [#allocation5], 1 }
 0x1a5   :  { %1547 = vsyncpa [#allocation5 + $0x1], 1 }
 0x1a6   :  { %1548 = vsyncpa [#allocation8], 1 }
 0x1a7   :  { %1550 = vsyncpa [#allocation8 + $0x1], 1 }
 0x1a8   :  { %1551 = vsyncpa [#allocation6], 1 }
 0x1a9   :  { %1553 = vsyncpa [#allocation6 + $0x1], 1 }

</bundles_post_ra>
